<compile_context>
chip_gen: v6e
topology: v6e:2x2x1
jax: 0.10.0
libtpu: 0.0.40
codegen_flags: <defaults>
</compile_context>

<pallas_src>
import jax
import jax.numpy as jnp
from jax.experimental import pallas as pl
from jax.experimental.pallas import tpu as pltpu


def gcn_kernel(x_ref, w1p_ref, w2_ref, bias_ref, o_ref):
    # x_ref:    (1, S, N)  current batch element
    # w1p_ref:  (N, N)     W1^T - I   (conv1 weight with residual folded in)
    # w2_ref:   (S, S)     conv2 weight
    # bias_ref: (S, N)     (W2 @ 1) b1^T  (conv1 bias propagated through conv2)
    # o_ref:    (1, S, N)
    xb = x_ref[0]                                                              # (S, N)
    y = jnp.dot(w2_ref[...], xb, preferred_element_type=jnp.float32)          # conv2 of (x-part)
    out = jnp.dot(y, w1p_ref[...], preferred_element_type=jnp.float32)        # conv1 + residual fold
    out = out + bias_ref[...]                                                 # folded conv1 bias
    o_ref[0] = jnp.maximum(out, 0.0).astype(o_ref.dtype)                      # ReLU


def gcn_forward(x, w1, b1, w2):
    """x: (B, S, N) float32; w1: (N, N) conv1 weight; b1: (N,) conv1 bias; w2: (S, S) conv2 weight."""
    B, S, N = x.shape

    # --- exact algebraic folding (f32); hoist out of the per-call path for static weights ---
    w1p = w1.T - jnp.eye(N, dtype=x.dtype)                       # fold "h - x" residual
    bias_mat = jnp.sum(w2, axis=1, keepdims=True) * b1[None, :]  # (S, N): (W2 @ 1) b1^T

    return pl.pallas_call(
        gcn_kernel,
        out_shape=jax.ShapeDtypeStruct((B, S, N), x.dtype),
        grid_spec=pltpu.PrefetchScalarGridSpec(
            num_scalar_prefetch=0,
            grid=(B,),
            in_specs=[
                pl.BlockSpec((1, S, N), lambda b: (b, 0, 0)),   # streamed per batch
                pl.BlockSpec((N, N), lambda b: (0, 0)),         # shared, stays resident
                pl.BlockSpec((S, S), lambda b: (0, 0)),         # shared, stays resident
                pl.BlockSpec((S, N), lambda b: (0, 0)),         # shared, stays resident
            ],
            out_specs=pl.BlockSpec((1, S, N), lambda b: (b, 0, 0)),
        ),
        compiler_params=pltpu.CompilerParams(
            dimension_semantics=("parallel",),                  # 2 TCs on v7x; no-op on v5e/v6e
        ),
    )(x, w1p, w2, bias_mat)


def gcn_reference(x, w1, b1, w2):
    # Pure-JAX reference mirroring the PyTorch forward exactly.
    h = jnp.einsum("bsm,nm->bsn", x, w1) + b1[None, None, :]
    h = h - x
    out = jnp.einsum("os,bsn->bon", w2, h)
    return jnp.maximum(out, 0.0)


if __name__ == "__main__":
    B = 2           # batch
    NUM_STATE = 32  # num_state (channel dim of conv2)
    NUM_NODE = 16   # num_node  (channel dim of conv1)

    key = jax.random.PRNGKey(0)
    kx, kw1, kb1, kw2 = jax.random.split(key, 4)

    # Input: (B, num_state, num_node), matching PyTorch NCL layout.
    x = jax.random.normal(kx, (B, NUM_STATE, NUM_NODE), dtype=jnp.float32)

    # Deterministic synthetic parameters (Conv1d kernel_size=1 weights squeezed).
    w1 = jax.random.normal(kw1, (NUM_NODE, NUM_NODE), dtype=jnp.float32) * 0.1    # conv1.weight[:, :, 0]
    b1 = jax.random.normal(kb1, (NUM_NODE,), dtype=jnp.float32) * 0.1             # conv1.bias
    w2 = jax.random.normal(kw2, (NUM_STATE, NUM_STATE), dtype=jnp.float32) * 0.1  # conv2.weight[:, :, 0]

    out = gcn_forward(x, w1, b1, w2)
    out = jax.block_until_ready(out)

    ref = gcn_reference(x, w1, b1, w2)
    assert out.shape == (B, NUM_STATE, NUM_NODE)
    assert jnp.allclose(out, ref, atol=1e-5, rtol=1e-5), "mismatch vs reference"

    print("KERNEL_OK")
</pallas_src>

<mosaic_0001>
module attributes {stable_mosaic.version = 11 : i64} {
  func.func @gcn_kernel(%arg0: i32, %arg1: memref<1x32x16xf32, #tpu.memory_space<vmem>>, %arg2: memref<16x16xf32, #tpu.memory_space<vmem>>, %arg3: memref<32x32xf32, #tpu.memory_space<vmem>>, %arg4: memref<32x16xf32, #tpu.memory_space<vmem>>, %arg5: memref<1x32x16xf32, #tpu.memory_space<vmem>>) attributes {dimension_semantics = [#tpu.dimension_semantics<parallel>], iteration_bounds = array<i64: 2>, scalar_prefetch = 0 : i64, scratch_operands = 0 : i64, tpu.core_type = #tpu.core_type<tc>, window_params = [{transform_indices = @transform_0, window_bounds = array<i64: 1, 32, 16>}, {pipeline_mode = #tpu.pipeline_mode<synchronous>, transform_indices = @transform_1, window_bounds = array<i64: 16, 16>}, {pipeline_mode = #tpu.pipeline_mode<synchronous>, transform_indices = @transform_2, window_bounds = array<i64: 32, 32>}, {pipeline_mode = #tpu.pipeline_mode<synchronous>, transform_indices = @transform_3, window_bounds = array<i64: 32, 16>}, {transform_indices = @transform_4, window_bounds = array<i64: 1, 32, 16>}]} {
    %c0 = arith.constant 0 : index
    %c0_0 = arith.constant 0 : index
    %c0_1 = arith.constant 0 : index
    %0 = vector.load %arg1[%c0, %c0_0, %c0_1] : memref<1x32x16xf32, #tpu.memory_space<vmem>>, vector<1x32x16xf32>
    %1 = vector.shape_cast %0 : vector<1x32x16xf32> to vector<32x16xf32>
    %c0_2 = arith.constant 0 : index
    %c0_3 = arith.constant 0 : index
    %2 = vector.load %arg3[%c0_2, %c0_3] : memref<32x32xf32, #tpu.memory_space<vmem>>, vector<32x32xf32>
    %cst = arith.constant dense<0.000000e+00> : vector<32x16xf32>
    %3 = tpu.matmul %2, %1, %cst {dimension_numbers = #tpu.dot_dimension_numbers<[1], [0], [0], [1], [0, 0, 1, 1], [], []>} : vector<32x32xf32>, vector<32x16xf32>, vector<32x16xf32> -> vector<32x16xf32>
    %c0_4 = arith.constant 0 : index
    %c0_5 = arith.constant 0 : index
    %4 = vector.load %arg2[%c0_4, %c0_5] : memref<16x16xf32, #tpu.memory_space<vmem>>, vector<16x16xf32>
    %cst_6 = arith.constant dense<0.000000e+00> : vector<32x16xf32>
    %5 = tpu.matmul %3, %4, %cst_6 {dimension_numbers = #tpu.dot_dimension_numbers<[1], [0], [0], [1], [0, 0, 1, 1], [], []>} : vector<32x16xf32>, vector<16x16xf32>, vector<32x16xf32> -> vector<32x16xf32>
    %c0_7 = arith.constant 0 : index
    %c0_8 = arith.constant 0 : index
    %6 = vector.load %arg4[%c0_7, %c0_8] : memref<32x16xf32, #tpu.memory_space<vmem>>, vector<32x16xf32>
    %7 = arith.addf %5, %6 : vector<32x16xf32>
    %cst_9 = arith.constant 0.000000e+00 : f32
    %8 = vector.broadcast %cst_9 : f32 to vector<32x16xf32>
    %9 = arith.maximumf %7, %8 : vector<32x16xf32>
    %c0_10 = arith.constant 0 : index
    %c0_11 = arith.constant 0 : index
    %c0_12 = arith.constant 0 : index
    %10 = vector.load %arg5[%c0_10, %c0_11, %c0_12] : memref<1x32x16xf32, #tpu.memory_space<vmem>>, vector<1x32x16xf32>
    %11 = vector.shape_cast %10 : vector<1x32x16xf32> to vector<32x16xf32>
    %12 = vector.shape_cast %9 : vector<32x16xf32> to vector<1x32x16xf32>
    tpu.vector_store %arg5[%c0_10, %c0_11, %c0_12], %12 {strides = array<i32>} : memref<1x32x16xf32, #tpu.memory_space<vmem>>, vector<1x32x16xf32>,
    return
  }
  func.func @transform_0(%arg0: i32) -> (i32, i32, i32) {
    %c0_i32 = arith.constant 0 : i32
    %c0_i32_0 = arith.constant 0 : i32
    %c0_i32_1 = arith.constant 0 : i32
    return %arg0, %c0_i32, %c0_i32_0 : i32, i32, i32
  }
  func.func @transform_1(%arg0: i32) -> (i32, i32) {
    %c0_i32 = arith.constant 0 : i32
    %c0_i32_0 = arith.constant 0 : i32
    %c0_i32_1 = arith.constant 0 : i32
    return %c0_i32, %c0_i32_0 : i32, i32
  }
  func.func @transform_2(%arg0: i32) -> (i32, i32) {
    %c0_i32 = arith.constant 0 : i32
    %c0_i32_0 = arith.constant 0 : i32
    %c0_i32_1 = arith.constant 0 : i32
    return %c0_i32, %c0_i32_0 : i32, i32
  }
  func.func @transform_3(%arg0: i32) -> (i32, i32) {
    %c0_i32 = arith.constant 0 : i32
    %c0_i32_0 = arith.constant 0 : i32
    %c0_i32_1 = arith.constant 0 : i32
    return %c0_i32, %c0_i32_0 : i32, i32
  }
  func.func @transform_4(%arg0: i32) -> (i32, i32, i32) {
    %c0_i32 = arith.constant 0 : i32
    %c0_i32_0 = arith.constant 0 : i32
    %c0_i32_1 = arith.constant 0 : i32
    return %arg0, %c0_i32, %c0_i32_0 : i32, i32, i32
  }
}

</mosaic_0001>

<bundles_post_ra>
// kernel: tpu_custom_call.1
= control target key start
LH: loop header
LB: loop body
LE: loop exit
PB: predicated region body
PF: predicated region fallthrough
CT: control target
= control target key end

     0   :  { %s571_s15 = smov 0   ;;  %s637_s0 = inlined_call_operand.vmem [shape: f32[2,32,16], index: 0, kind: input, shape index: {}]   ;;  %s638_s1 = inlined_call_operand.vmem [shape: f32[16,16], index: 1, kind: input, shape index: {}]   ;;  %s639_s2 = inlined_call_operand.vmem [shape: f32[32,32], index: 2, kind: input, shape index: {}]   ;;  %s640_s3 = inlined_call_operand.vmem [shape: f32[32,16], index: 3, kind: input, shape index: {}]   ;;  %s641_s4 = inlined_call_operand.vmem [shape: f32[2,32,16], index: 4, kind: output, shape index: {}]  }
   0x1 LB: > { %s471_s16 = sadd.s32 4294967295, %s544_s15   ;;  %p475_p0 = scmp.ge.s32.totalorder %s544_s15, 1  ;;  %s544_s15 = sphi %s571_s15, %s14_s15  }
   0x2   : > { %p162_p1 = scmp.lt.s32.totalorder %s544_s15, 3 }
   0x4   : > { %p163_p2 = pnand %p475_p0, %p162_p1 }
   0x5   : > { %p188_p3 = scmp.lt.s32.totalorder (!%p163_p2), %s471_s16, 1 }
   0x6   : > { %166 = sbr.rel (%p163_p2) target bundleno = 423 (0x1a7), region = 36 }
   0xb   : > { %v202_v0 = vld [vmem:[%s639_s2] sm:$0xff]  ;;  %vm206_vm0 = vcmask 261120   ;;  %s643_s16 = smov (!%p188_p3, %s471_s16), 1  ;;  %v203_v5 = vld [vmem:[%s639_s2 + $0x8] sm:$0xff]  ;;  %v204_v6 = vld [vmem:[%s639_s2 + $0x10] sm:$0xff]  ;;  %vm310_vm1 = vcmask 130048  }
   0xc   : > { %514 = vmatprep.mubr.msk.f32.mxu0 %vm206_vm0, %v202_v0  ;;  %s490_s19 = sshll.u32 %s643_s16, 5  ;;  %v205_v7 = vld [vmem:[%s639_s2 + $0x18] sm:$0xff]  ;;  %v305_v8 = vld [vmem:[%s638_s1 + $0x8] sm:$0xff]  ;;  %v304_v9 = vld [vmem:[%s638_s1] sm:$0xff] }
   0xd   : > { %s192_s22 = scalar_lea.vmem %s637_s0, %s490_s19  ;;  %520 = vmatprep.subr.mxu1 %v305_v8  ;;  %v307_v14 = vld [vmem:[%s640_s3 + $0x8] sm:$0xff]  ;;  %v306_v16 = vld [vmem:[%s640_s3] sm:$0xff]  ;;  %s197_s13 = scalar_lea.vmem %s641_s4, %s490_s19  ;;  %v309_v19 = vld [vmem:[%s640_s3 + $0x18] sm:$0xff] }
   0xe   : > { %v201_v1 = vld [vmem:[%s192_s22 + $0x18] sm:$0xff]  ;;  %v200_v2 = vld [vmem:[%s192_s22 + $0x10] sm:$0xff]  ;;  %v199_v3 = vld [vmem:[%s192_s22 + $0x8] sm:$0xff]  ;;  %521 = vmatpush3.msra.mxu1 %v305_v8 }
   0xf   : > { %506 = vmatprep.subr.mxu0 %v201_v1  ;;  %v198_v4 = vld [vmem:[%s192_s22] sm:$0xff]  ;;  %522 = vmatprep.subr.mxu1 %v304_v9  ;;  %v308_v23 = vld [vmem:[%s640_s3 + $0x10] sm:$0xff] }
  0x10   : > { %507 = vmatpush3.msra.mxu0 %v201_v1  ;;  %523 = vmatpush3.msra.mxu1 %v304_v9 }
  0x11   : > { %508 = vmatprep.subr.mxu0 %v200_v2 }
  0x12   : > { %509 = vmatpush3.msra.mxu0 %v200_v2 }
  0x13   : > { %510 = vmatprep.subr.mxu0 %v199_v3 }
  0x14   : > { %511 = vmatpush3.msra.mxu0 %v199_v3 }
  0x15   : > { %512 = vmatprep.subr.mxu0 %v198_v4 }
  0x16   : > { %513 = vmatpush3.msra.mxu0 %v198_v4 }
  0x17   : > { %515 = vmatmul.mubr.msk.f32.vlgmr.msra.gmra.mxu0 %vm206_vm0, %v203_v5 }
  0x18   : > { %517 = vmatprep.mubr.msk.f32.mxu0 %vm206_vm0, %v204_v6 }
  0x1b   : > { %518 = vmatmul.mubr.msk.f32.gmra.mxu0 %vm206_vm0, %v205_v7 }
  0xd7   : > { %v516_v10 = vpop.f32.mrf.mxu0 }
  0xd9   : > { %v285_v11 = vpop.f32.mrf.mxu0 }
  0xda   : > { %524 = vmatprep.mubr.msk.f32.mxu1 %vm310_vm1, %v285_v11 }
  0xdb   : > { %v519_v12 = vpop.f32.mrf.mxu0  ;;  %525 = vmatmul.mubr.msk.f32.vlgmr.msra.gmra.mxu1 %vm310_vm1, %v516_v10 }
  0xdd   : > { %v295_v13 = vpop.f32.mrf.mxu0 }
  0xde   : > { %527 = vmatprep.mubr.msk.f32.mxu1 %vm310_vm1, %v295_v13 }
  0xdf   : > { %528 = vmatmul.mubr.msk.f32.gmra.mxu1 %vm310_vm1, %v519_v12 }
 0x19b   : > { %v526_v15 = vpop.f32.mrf.mxu1 }
 0x19c   : > { %v395_v17 = vadd.f32 %v526_v15, %v307_v14 }
 0x19d   : > { %v389_v18 = vpop.f32.mrf.mxu1 }
 0x19e   : > { %v409_v20 = vmax.f32 %v395_v17, 0.0  ;;  %v390_v21 = vadd.f32 %v389_v18, %v306_v16 }
 0x19f   : > { %v529_v22 = vpop.f32.mrf.mxu1 }
 0x1a0   : > { %413 = vst.msk [vmem:[%s197_s13 + $0x8] sm:$0xff] %vm310_vm1, %v409_v20  ;;  %v408_v24 = vmax.f32 %v390_v21, 0.0  ;;  %v405_v25 = vadd.f32 %v529_v22, %v309_v19 }
 0x1a1   : > { %v399_v26 = vpop.f32.mrf.mxu1 }
 0x1a2   : > { %412 = vst.msk [vmem:[%s197_s13] sm:$0xff] %vm310_vm1, %v408_v24  ;;  %v411_v27 = vmax.f32 %v405_v25, 0.0  ;;  %v400_v28 = vadd.f32 %v399_v26, %v308_v23 }
 0x1a4   : > { %415 = vst.msk [vmem:[%s197_s13 + $0x18] sm:$0xff] %vm310_vm1, %v411_v27  ;;  %v410_v29 = vmax.f32 %v400_v28, 0.0 }
 0x1a6   : > { %414 = vst.msk [vmem:[%s197_s13 + $0x10] sm:$0xff] %vm310_vm1, %v410_v29 }
 0x1a7 PF: > { %s14_s15 = sadd.s32 1, %s544_s15  }
 0x1a8   : > { %p11_p4 = scmp.ge.s32.totalorder %s14_s15, 4  }
 0x1aa   :  { %13 = sbr.rel (!%p11_p4) target bundleno = 1 (0x1), region = 66 }

</bundles_post_ra>
